<compile_context>
chip_gen: v6e
topology: v6e:2x2x1
jax: 0.10.0
libtpu: 0.0.40
codegen_flags: <defaults>
</compile_context>

<pallas_src>
import functools

import jax
import jax.numpy as jnp
from jax.experimental import pallas as pl
from jax.experimental.pallas import tpu as pltpu


def _round_up(n, m):
    return ((n + m - 1) // m) * m


def _device_kind():
    try:
        return jax.devices()[0].device_kind.lower()
    except Exception:
        return ""


def _has_bf16_eup(kind):
    # bf16 VPU/EUP exists on v6e / v7x; not on v5e and older generations.
    return any(tag in kind for tag in ("v6", "v7", "tpu7"))


def _classifier_head_kernel(x_ref, w1_ref, b1_ref, w2_ref, b2_ref, o_ref, *,
                            tanh_dtype):
    """One batch tile of the ViT classifier head.

    x_ref : (TILE_B, E)      CLS-token embeddings for this batch tile
    w1_ref: (E, E)           fc1 weight, (in, out) layout (VMEM resident)
    b1_ref: (1, E)           fc1 bias
    w2_ref: (E, C_pad)       fc2 weight, (in, out), lane-padded (resident)
    b2_ref: (1, C_pad)       fc2 bias, lane-padded
    o_ref : (TILE_B, C_pad)  f32 logits (lane-dense store)
    """
    x = x_ref[...]
    if x.dtype != w1_ref.dtype:          # static at trace time
        x = x.astype(w1_ref.dtype)

    # Plain NN matmuls on the MXU (weights pre-transposed at load time, so no
    # per-step XLU transpose of the resident weights).
    h = jnp.dot(x, w1_ref[...], preferred_element_type=jnp.float32)
    h = h + b1_ref[...].astype(jnp.float32)            # bias add in f32 (VPU)
    # tanh on the EUP; bf16 on v6e/v7x when weights are bf16 (~2x EUP
    # throughput, halves the intermediate), f32 on v5e (no bf16 EUP).
    h = jnp.tanh(h.astype(tanh_dtype))

    out = jnp.dot(h.astype(w2_ref.dtype), w2_ref[...],
                  preferred_element_type=jnp.float32)
    o_ref[...] = (out + b2_ref[...].astype(jnp.float32)).astype(o_ref.dtype)


def prepare_classifier_params(w1, b1, w2, b2):
    """One-time parameter prep (run at load time, NOT per forward call).

    w1: (E, E)  fc1.weight, torch (out, in)      b1: (E,)  fc1.bias
    w2: (C, E)  fc2.weight, torch (out, in)      b2: (C,)  fc2.bias
    """
    E = w1.shape[1]
    C = w2.shape[0]
    C_pad = _round_up(C, 128)

    w1_t = jnp.asarray(w1).T                      # (E, E)      (in, out)
    w2_t = jnp.asarray(w2).T                      # (E, C)      (in, out)
    b2_v = jnp.asarray(b2)
    if C_pad != C:
        w2_t = jnp.pad(w2_t, ((0, 0), (0, C_pad - C)))
        b2_v = jnp.pad(b2_v, ((0, C_pad - C),))
    return dict(
        w1=w1_t,
        b1=jnp.asarray(b1).reshape(1, E),
        w2=w2_t,
        b2=b2_v.reshape(1, C_pad),
        embed_dim=E,
        n_classes=C,
    )


def classifier_forward(x, params, *, tile_b_max=256):
    """logits = fc2(tanh(fc1(x[:, 0, :]))), returned as f32 (B, C).

    x      : (B, S, E) activations
    params : output of prepare_classifier_params
    """
    B, S, E = x.shape
    C = params["n_classes"]
    w1, b1, w2, b2 = params["w1"], params["b1"], params["w2"], params["b2"]
    C_pad = w2.shape[1]
    assert w1.shape == (E, E) and w2.shape[0] == E

    # --- CLS-token selection ------------------------------------------------
    if E % 128 == 0 and S > 1:
        # Zero-copy CLS selection: view x as (B, S*E); the first E lanes of
        # each row are exactly token 0, picked by the BlockSpec window.
        # Assumes x is standard row-major contiguous (default XLA layout); a
        # non-default layout would make XLA insert a copy here (perf only).
        x_in = x.reshape(B, S * E)
    else:
        # TODO(synk): an Element-indexed / manual-DMA row window could avoid
        # this (B, E) HBM copy for unaligned E; real ViT dims are 128-aligned.
        x_in = x[:, 0, :]

    # --- Batch tile sizing ---------------------------------------------------
    if B <= 64:
        # Small batch: single grid step; splitting would only duplicate the
        # resident weight fetch per core without compute to amortize it.
        tile_b = B
    else:
        # >= 4 grid steps (>= 2 per TC on v7x): both cores get work and the
        # CLS/output DMAs have a pipeline to hide behind.  Keep tiles >= 64
        # rows (multiples of 8) so any per-core weight re-fetch is amortized.
        tile_b = min(tile_b_max, max(64, _round_up(pl.cdiv(B, 4), 8)))
    grid = (pl.cdiv(B, tile_b),)

    # --- VMEM budgeting / buffering ------------------------------------------
    kind = _device_kind()
    w_itemsize = jnp.dtype(w1.dtype).itemsize
    x_itemsize = jnp.dtype(x.dtype).itemsize
    weight_bytes = (E * E + E * C_pad + E + C_pad) * w_itemsize

    # Resident operands (constant index_map -> fetched once).  Single-buffer
    # them when they are big enough that default double-buffering would blow
    # past v5e's 16 MiB scoped default / pressure v7x's 32-of-64 MiB.
    single_buffer_weights = weight_bytes > (4 << 20)

    def _resident_spec(shape):
        if single_buffer_weights:
            return pl.BlockSpec(shape, lambda i: (0, 0),
                                pipeline_mode=pl.Buffered(1))
        return pl.BlockSpec(shape, lambda i: (0, 0))

    weight_buf = 1 if single_buffer_weights else 2
    vmem_need = (weight_buf * weight_bytes
                 + 2 * tile_b * E * x_itemsize        # double-buffered CLS tiles
                 + 2 * tile_b * C_pad * 4)            # double-buffered f32 logits
    vmem_limit = None
    if vmem_need > (12 << 20):
        cap = (48 << 20) if ("v7" in kind or "tpu7" in kind) else (96 << 20)
        vmem_limit = int(min(cap, 2 * vmem_need))

    tanh_dtype = (jnp.bfloat16
                  if (w1.dtype == jnp.bfloat16 and _has_bf16_eup(kind))
                  else jnp.float32)

    cost = pl.CostEstimate(
        flops=2 * B * E * (E + C_pad),
        transcendentals=B * E,
        bytes_accessed=int(weight_bytes + B * E * x_itemsize + B * C_pad * 4),
    )

    out = pl.pallas_call(
        functools.partial(_classifier_head_kernel, tanh_dtype=tanh_dtype),
        out_shape=jax.ShapeDtypeStruct((B, C_pad), jnp.float32),  # f32 logits
        grid=grid,
        in_specs=[
            # Only the CLS columns of each batch row are DMA'd (strided
            # window), double-buffered across grid steps.
            pl.BlockSpec((tile_b, E), lambda i: (i, 0)),
            _resident_spec((E, E)),
            _resident_spec((1, E)),
            _resident_spec((E, C_pad)),
            _resident_spec((1, C_pad)),
        ],
        out_specs=pl.BlockSpec((tile_b, C_pad), lambda i: (i, 0)),
        compiler_params=pltpu.CompilerParams(
            dimension_semantics=("parallel",),
            vmem_limit_bytes=vmem_limit,
        ),
        cost_estimate=cost,
    )(x_in, w1, b1, w2, b2)

    return out[:, :C]


if __name__ == "__main__":
    key = jax.random.PRNGKey(0)
    kx, kw1, kb1, kw2, kb2, kx2 = jax.random.split(key, 6)

    def torch_ref(x, w1, b1, w2, b2):
        return jnp.tanh(x[:, 0, :] @ w1.T + b1) @ w2.T + b2

    # --- Test 1: lane-aligned embed dim (zero-copy CLS path), f32 ------------
    B, S, E, C = 4, 8, 128, 10
    x = jax.random.normal(kx, (B, S, E), dtype=jnp.float32)
    w1 = jax.random.normal(kw1, (E, E), dtype=jnp.float32) * 0.02
    b1 = jax.random.normal(kb1, (E,), dtype=jnp.float32) * 0.02
    w2 = jax.random.normal(kw2, (C, E), dtype=jnp.float32) * 0.02
    b2 = jax.random.normal(kb2, (C,), dtype=jnp.float32) * 0.02

    params = prepare_classifier_params(w1, b1, w2, b2)
    out = jax.block_until_ready(classifier_forward(x, params))
    ref = torch_ref(x, w1, b1, w2, b2)
    assert out.shape == (B, C)
    assert jnp.allclose(out, ref, atol=1e-5, rtol=1e-5)

    # --- Test 2: small unaligned embed dim (fallback CLS path), f32 ----------
    B2, S2, E2, C2 = 2, 8, 32, 8
    x2 = jax.random.normal(kx2, (B2, S2, E2), dtype=jnp.float32)
    w1s = jax.random.normal(kw1, (E2, E2), dtype=jnp.float32) * 0.02
    b1s = jax.random.normal(kb1, (E2,), dtype=jnp.float32) * 0.02
    w2s = jax.random.normal(kw2, (C2, E2), dtype=jnp.float32) * 0.02
    b2s = jax.random.normal(kb2, (C2,), dtype=jnp.float32) * 0.02

    params2 = prepare_classifier_params(w1s, b1s, w2s, b2s)
    out2 = jax.block_until_ready(classifier_forward(x2, params2))
    ref2 = torch_ref(x2, w1s, b1s, w2s, b2s)
    assert out2.shape == (B2, C2)
    assert jnp.allclose(out2, ref2, atol=1e-5, rtol=1e-5)

    # --- Test 3: bf16 activations + weights, f32 accumulation / f32 logits ---
    xb = x.astype(jnp.bfloat16)
    params_b = prepare_classifier_params(
        w1.astype(jnp.bfloat16), b1.astype(jnp.bfloat16),
        w2.astype(jnp.bfloat16), b2.astype(jnp.bfloat16))
    out3 = jax.block_until_ready(classifier_forward(xb, params_b))
    ref3 = torch_ref(xb.astype(jnp.float32),
                     w1.astype(jnp.bfloat16).astype(jnp.float32),
                     b1.astype(jnp.bfloat16).astype(jnp.float32),
                     w2.astype(jnp.bfloat16).astype(jnp.float32),
                     b2.astype(jnp.bfloat16).astype(jnp.float32))
    assert out3.shape == (B, C)
    assert out3.dtype == jnp.float32
    assert jnp.allclose(out3, ref3, atol=2e-2, rtol=2e-2)

    print("KERNEL_OK")
</pallas_src>

<mosaic_0001>
module attributes {stable_mosaic.version = 11 : i64} {
  func.func @_classifier_head_kernel(%arg0: i32, %arg1: memref<4x128xf32, #tpu.memory_space<vmem>>, %arg2: memref<128x128xf32, #tpu.memory_space<vmem>>, %arg3: memref<1x128xf32, #tpu.memory_space<vmem>>, %arg4: memref<128x128xf32, #tpu.memory_space<vmem>>, %arg5: memref<1x128xf32, #tpu.memory_space<vmem>>, %arg6: memref<4x128xf32, #tpu.memory_space<vmem>>) attributes {dimension_semantics = [#tpu.dimension_semantics<parallel>], iteration_bounds = array<i64: 1>, scalar_prefetch = 0 : i64, scratch_operands = 0 : i64, tpu.core_type = #tpu.core_type<tc>, window_params = [{transform_indices = @transform_0, window_bounds = array<i64: 4, 128>}, {pipeline_mode = #tpu.pipeline_mode<synchronous>, transform_indices = @transform_1, window_bounds = array<i64: 128, 128>}, {pipeline_mode = #tpu.pipeline_mode<synchronous>, transform_indices = @transform_2, window_bounds = array<i64: 1, 128>}, {pipeline_mode = #tpu.pipeline_mode<synchronous>, transform_indices = @transform_3, window_bounds = array<i64: 128, 128>}, {pipeline_mode = #tpu.pipeline_mode<synchronous>, transform_indices = @transform_4, window_bounds = array<i64: 1, 128>}, {transform_indices = @transform_5, window_bounds = array<i64: 4, 128>}]} {
    %c0 = arith.constant 0 : index
    %c0_0 = arith.constant 0 : index
    %0 = vector.load %arg1[%c0, %c0_0] : memref<4x128xf32, #tpu.memory_space<vmem>>, vector<4x128xf32>
    %c0_1 = arith.constant 0 : index
    %c0_2 = arith.constant 0 : index
    %1 = vector.load %arg2[%c0_1, %c0_2] : memref<128x128xf32, #tpu.memory_space<vmem>>, vector<128x128xf32>
    %cst = arith.constant dense<0.000000e+00> : vector<4x128xf32>
    %2 = tpu.matmul %0, %1, %cst {dimension_numbers = #tpu.dot_dimension_numbers<[1], [0], [0], [1], [0, 0, 1, 1], [], []>} : vector<4x128xf32>, vector<128x128xf32>, vector<4x128xf32> -> vector<4x128xf32>
    %c0_3 = arith.constant 0 : index
    %c0_4 = arith.constant 0 : index
    %3 = vector.load %arg3[%c0_3, %c0_4] : memref<1x128xf32, #tpu.memory_space<vmem>>, vector<1x128xf32>
    %4 = vector.broadcast %3 : vector<1x128xf32> to vector<4x128xf32>
    %5 = arith.addf %2, %4 : vector<4x128xf32>
    %6 = math.tanh %5 : vector<4x128xf32>
    %c0_5 = arith.constant 0 : index
    %c0_6 = arith.constant 0 : index
    %7 = vector.load %arg4[%c0_5, %c0_6] : memref<128x128xf32, #tpu.memory_space<vmem>>, vector<128x128xf32>
    %cst_7 = arith.constant dense<0.000000e+00> : vector<4x128xf32>
    %8 = tpu.matmul %6, %7, %cst_7 {dimension_numbers = #tpu.dot_dimension_numbers<[1], [0], [0], [1], [0, 0, 1, 1], [], []>} : vector<4x128xf32>, vector<128x128xf32>, vector<4x128xf32> -> vector<4x128xf32>
    %c0_8 = arith.constant 0 : index
    %c0_9 = arith.constant 0 : index
    %9 = vector.load %arg5[%c0_8, %c0_9] : memref<1x128xf32, #tpu.memory_space<vmem>>, vector<1x128xf32>
    %10 = vector.broadcast %9 : vector<1x128xf32> to vector<4x128xf32>
    %11 = arith.addf %8, %10 : vector<4x128xf32>
    %c0_10 = arith.constant 0 : index
    %c0_11 = arith.constant 0 : index
    %12 = vector.load %arg6[%c0_10, %c0_11] : memref<4x128xf32, #tpu.memory_space<vmem>>, vector<4x128xf32>
    tpu.vector_store %arg6[%c0_10, %c0_11], %11 {strides = array<i32>} : memref<4x128xf32, #tpu.memory_space<vmem>>, vector<4x128xf32>,
    return
  }
  func.func @transform_0(%arg0: i32) -> (i32, i32) {
    %c0_i32 = arith.constant 0 : i32
    %c0_i32_0 = arith.constant 0 : i32
    return %arg0, %c0_i32 : i32, i32
  }
  func.func @transform_1(%arg0: i32) -> (i32, i32) {
    %c0_i32 = arith.constant 0 : i32
    %c0_i32_0 = arith.constant 0 : i32
    %c0_i32_1 = arith.constant 0 : i32
    return %c0_i32, %c0_i32_0 : i32, i32
  }
  func.func @transform_2(%arg0: i32) -> (i32, i32) {
    %c0_i32 = arith.constant 0 : i32
    %c0_i32_0 = arith.constant 0 : i32
    %c0_i32_1 = arith.constant 0 : i32
    return %c0_i32, %c0_i32_0 : i32, i32
  }
  func.func @transform_3(%arg0: i32) -> (i32, i32) {
    %c0_i32 = arith.constant 0 : i32
    %c0_i32_0 = arith.constant 0 : i32
    %c0_i32_1 = arith.constant 0 : i32
    return %c0_i32, %c0_i32_0 : i32, i32
  }
  func.func @transform_4(%arg0: i32) -> (i32, i32) {
    %c0_i32 = arith.constant 0 : i32
    %c0_i32_0 = arith.constant 0 : i32
    %c0_i32_1 = arith.constant 0 : i32
    return %c0_i32, %c0_i32_0 : i32, i32
  }
  func.func @transform_5(%arg0: i32) -> (i32, i32) {
    %c0_i32 = arith.constant 0 : i32
    %c0_i32_0 = arith.constant 0 : i32
    return %arg0, %c0_i32 : i32, i32
  }
}

</mosaic_0001>

<bundles_post_ra>
// kernel: tpu_custom_call.1
= control target key start
LH: loop header
LB: loop body
LE: loop exit
PB: predicated region body
PF: predicated region fallthrough
CT: control target
= control target key end

     0   :  { %10 = vsyncpa [#allocation3], 0  ;;  %s557_s0 = inlined_call_operand.hbm [shape: f32[4,1024], index: 0, kind: input, shape index: {}]   ;;  %s558_s1 = inlined_call_operand.hbm [shape: f32[128,128], index: 1, kind: input, shape index: {}]   ;;  %s559_s2 = inlined_call_operand.vmem [shape: f32[1,128], index: 2, kind: input, shape index: {}]   ;;  %s560_s3 = inlined_call_operand.hbm [shape: f32[128,128], index: 3, kind: input, shape index: {}]   ;;  %s561_s4 = inlined_call_operand.vmem [shape: f32[1,128], index: 4, kind: input, shape index: {}]   ;;  %s562_s5 = inlined_call_operand.hbm [shape: f32[4,128], index: 5, kind: output, shape index: {}]  }
   0x1   :  { %11 = vsyncpa [#allocation6], 0 }
   0x2   :  { %12 = vsyncpa [#allocation4], 0  ;;  %s467_s18 = smov [#allocation5]  }
   0x3   :  { %s28_s19 = sshll.u32 %s467_s18, 4  ;;  %s29_s19 = int_to_ptr.vmem [resolvable:$true] %s28_s19 }
   0x4   :  { %s389_s20 = scalar_lea.vmem %s29_s19, 2048  ;;  %p394_p1 = scmp.lt.s32.totalorder %s29_s19, %s29_s19 }
   0x5   :  { %p390_p0 = scmp.ne.s32.totalorder %s29_s19, %s389_s20  ;;  %p395_p2 = scmp.lt.s32.totalorder %s389_s20, %s389_s20 }
   0x7   :  { %p396_p3 = por %p395_p2, %p394_p1 }
   0x9   :  { %p397_p4 = pnand %p396_p3, %p390_p0 }
   0xb   :  { %400 = shalt.err (!%p397_p4)
}
   0xc   :  { %s468_s21 = smov 128   ;;  %s469_s22 = smov 8  }
   0xd   :  { %34 = dma.hbm_to_vmem [thread:$0]  %s558_s1, 2048, %s29_s19, [#allocation6], %s468_s21, %s468_s21, %s469_s22  }
   0xe   :  { %s470_s25 = smov [#allocation2]   ;;  %s471_s27 = smov [#allocation7]  }
   0xf   :  { %s19_s26 = sshll.u32 %s470_s25, 4  ;;  %s42_s28 = sshll.u32 %s471_s27, 4  ;;  %s20_s26 = int_to_ptr.vmem [resolvable:$true] %s19_s26  ;;  %s43_s28 = int_to_ptr.vmem [resolvable:$true] %s42_s28 }
  0x10   :  { %s409_s29 = scalar_lea.vmem %s20_s26, 64  ;;  %p414_p6 = scmp.lt.s32.totalorder %s20_s26, %s20_s26 }
  0x11   :  { %p410_p5 = scmp.ne.s32.totalorder %s20_s26, %s409_s29  ;;  %p415_p7 = scmp.lt.s32.totalorder %s409_s29, %s409_s29 }
  0x13   :  { %p416_p8 = por %p415_p7, %p414_p6 }
  0x15   :  { %p417_p9 = pnand %p416_p8, %p410_p5 }
  0x17   :  { %420 = shalt.err (!%p417_p9)
}
  0x18   :  { %22 = dma.hbm_to_vmem [thread:$0]  %s557_s0, 64, %s20_s26, [#allocation3]  }
  0x19   :  { %s429_s7 = scalar_lea.vmem %s43_s28, 2048  ;;  %p434_p11 = scmp.lt.s32.totalorder %s43_s28, %s43_s28 }
  0x1a   :  { %p430_p10 = scmp.ne.s32.totalorder %s43_s28, %s429_s7  ;;  %p435_p12 = scmp.lt.s32.totalorder %s429_s7, %s429_s7 }
  0x1c   :  { %p436_p13 = por %p435_p12, %p434_p11 }
  0x1e   :  { %p437_p0 = pnand %p436_p13, %p430_p10 }
  0x20   :  { %440 = shalt.err (!%p437_p0)
}
  0x21   :  { %48 = dma.hbm_to_vmem [thread:$0]  %s560_s3, 2048, %s43_s28, [#allocation6], %s468_s21, %s468_s21, %s469_s22  }
  0x22   :  { %461 = dma.done.wait [#allocation3], 64  }
  0x23   :  { %462 = vsyncadd [#allocation3], 4294967232 }
  0x24   :  { %463 = dma.done.wait [#allocation6], 4096  }
  0x25   :  { %464 = vsyncadd [#allocation6], 4294963200  ;;  %v472_v0 = vmov 0.0   ;;  %vm473_vm0 = vmmov 0   ;;  %v76_v1 = vld [vmem:[#allocation5 + $0x78] sm:$0xff]  ;;  %v75_v2 = vld [vmem:[#allocation5 + $0x70] sm:$0xff] }
  0x26   :  { %301 = vmatprep.subr.mxu0 %v472_v0  ;;  %333 = vmatprep.mubr.msk.f32.mxu0 %vm473_vm0, %v472_v0  ;;  %v74_v3 = vld [vmem:[#allocation5 + $0x68] sm:$0xff]  ;;  %v73_v4 = vld [vmem:[#allocation5 + $0x60] sm:$0xff]  ;;  %v170_v5 = vld [vmem:[#allocation7 + $0x78] sm:$0xff]  ;;  %s474_s11 = smov [#allocation8]  }
  0x27   :  { %336 = vmatprep.subr.mxu1 %v472_v0  ;;  %368 = vmatprep.mubr.msk.f32.mxu1 %vm473_vm0, %v472_v0  ;;  %v72_v6 = vld [vmem:[#allocation5 + $0x58] sm:$0xff]  ;;  %v169_v7 = vld [vmem:[#allocation7 + $0x70] sm:$0xff]  ;;  %v168_v8 = vld [vmem:[#allocation7 + $0x68] sm:$0xff]  ;;  %s255_s12 = sshll.u32 %s474_s11, 4  ;;  %s256_s12 = int_to_ptr.vmem [resolvable:$true] %s255_s12 }
  0x28   :  { %302 = vmatpush3.msra.mxu0 %v76_v1  ;;  %337 = vmatpush3.msra.mxu1 %v170_v5  ;;  %v71_v9 = vld [vmem:[#allocation5 + $0x50] sm:$0xff]  ;;  %v167_v10 = vld [vmem:[#allocation7 + $0x60] sm:$0xff]  ;;  %v70_v11 = vld [vmem:[#allocation5 + $0x48] sm:$0xff]  ;;  %s441_s13 = scalar_lea.vmem %s256_s12, 64  ;;  %p446_p2 = scmp.lt.s32.totalorder %s256_s12, %s256_s12 }
  0x29   :  { %303 = vmatprep.subr.mxu0 %v472_v0  ;;  %338 = vmatprep.subr.mxu1 %v472_v0  ;;  %v166_v12 = vld [vmem:[#allocation7 + $0x58] sm:$0xff]  ;;  %v69_v13 = vld [vmem:[#allocation5 + $0x40] sm:$0xff]  ;;  %v165_v14 = vld [vmem:[#allocation7 + $0x50] sm:$0xff]  ;;  %p442_p1 = scmp.ne.s32.totalorder %s256_s12, %s441_s13  ;;  %p447_p3 = scmp.lt.s32.totalorder %s441_s13, %s441_s13 }
  0x2a   :  { %304 = vmatpush3.msra.mxu0 %v75_v2  ;;  %339 = vmatpush3.msra.mxu1 %v169_v7  ;;  %v68_v15 = vld [vmem:[#allocation5 + $0x38] sm:$0xff]  ;;  %v164_v16 = vld [vmem:[#allocation7 + $0x48] sm:$0xff]  ;;  %v67_v17 = vld [vmem:[#allocation5 + $0x30] sm:$0xff] }
  0x2b   :  { %305 = vmatprep.subr.mxu0 %v472_v0  ;;  %340 = vmatprep.subr.mxu1 %v472_v0  ;;  %v66_v18 = vld [vmem:[#allocation5 + $0x28] sm:$0xff]  ;;  %v65_v19 = vld [vmem:[#allocation5 + $0x20] sm:$0xff]  ;;  %v64_v20 = vld [vmem:[#allocation5 + $0x18] sm:$0xff]  ;;  %p448_p4 = por %p447_p3, %p446_p2 }
  0x2c   :  { %306 = vmatpush3.msra.mxu0 %v74_v3  ;;  %341 = vmatpush3.msra.mxu1 %v168_v8  ;;  %v63_v21 = vld [vmem:[#allocation5 + $0x10] sm:$0xff]  ;;  %v62_v22 = vld [vmem:[#allocation5 + $0x8] sm:$0xff]  ;;  %v61_v23 = vld [vmem:[#allocation5] sm:$0xff] }
  0x2d   :  { %307 = vmatprep.subr.mxu0 %v472_v0  ;;  %342 = vmatprep.subr.mxu1 %v472_v0  ;;  %v60_v24 = vld [vmem:[#allocation2] sm:$0xf]  ;;  %v163_v25 = vld [vmem:[#allocation7 + $0x40] sm:$0xff]  ;;  %v161_v27 = vld [vmem:[#allocation7 + $0x30] sm:$0xff]  ;;  %p449_p5 = pnand %p448_p4, %p442_p1 }
  0x2e   :  { %308 = vmatpush3.msra.mxu0 %v73_v4  ;;  %343 = vmatpush3.msra.mxu1 %v167_v10  ;;  %v162_v26 = vld [vmem:[#allocation7 + $0x38] sm:$0xff]  ;;  %v160_v28 = vld [vmem:[#allocation7 + $0x28] sm:$0xff]  ;;  %v159_v29 = vld [vmem:[#allocation7 + $0x20] sm:$0xff] }
  0x2f   :  { %309 = vmatprep.subr.mxu0 %v472_v0  ;;  %344 = vmatprep.subr.mxu1 %v472_v0  ;;  %v158_v30 = vld [vmem:[#allocation7 + $0x18] sm:$0xff]  ;;  %v157_v31 = vld [vmem:[#allocation7 + $0x10] sm:$0xff]  ;;  %v156_v32 = vld [vmem:[#allocation7 + $0x8] sm:$0xff] }
  0x30   :  { %310 = vmatpush3.msra.mxu0 %v72_v6  ;;  %345 = vmatpush3.msra.mxu1 %v166_v12  ;;  %v155_v33 = vld [vmem:[#allocation7] sm:$0xff]  ;;  %v265_v34 = vld [vmem:[%s559_s2] ss:$0 sm:$0xff] }
  0x31   :  { %311 = vmatprep.subr.mxu0 %v472_v0  ;;  %346 = vmatprep.subr.mxu1 %v472_v0  ;;  %v266_v39 = vld [vmem:[%s561_s4] ss:$0 sm:$0xff] }
  0x32   :  { %312 = vmatpush3.msra.mxu0 %v71_v9  ;;  %347 = vmatpush3.msra.mxu1 %v165_v14 }
  0x33   :  { %313 = vmatprep.subr.mxu0 %v472_v0  ;;  %348 = vmatprep.subr.mxu1 %v472_v0 }
  0x34   :  { %314 = vmatpush3.msra.mxu0 %v70_v11  ;;  %349 = vmatpush3.msra.mxu1 %v164_v16 }
  0x35   :  { %315 = vmatprep.subr.mxu0 %v472_v0  ;;  %350 = vmatprep.subr.mxu1 %v472_v0 }
  0x36   :  { %316 = vmatpush3.msra.mxu0 %v69_v13  ;;  %351 = vmatpush3.msra.mxu1 %v163_v25 }
  0x37   :  { %317 = vmatprep.subr.mxu0 %v472_v0  ;;  %352 = vmatprep.subr.mxu1 %v472_v0 }
  0x38   :  { %318 = vmatpush3.msra.mxu0 %v68_v15  ;;  %353 = vmatpush3.msra.mxu1 %v162_v26 }
  0x39   :  { %319 = vmatprep.subr.mxu0 %v472_v0  ;;  %354 = vmatprep.subr.mxu1 %v472_v0 }
  0x3a   :  { %320 = vmatpush3.msra.mxu0 %v67_v17  ;;  %355 = vmatpush3.msra.mxu1 %v161_v27 }
  0x3b   :  { %321 = vmatprep.subr.mxu0 %v472_v0  ;;  %356 = vmatprep.subr.mxu1 %v472_v0 }
  0x3c   :  { %322 = vmatpush3.msra.mxu0 %v66_v18  ;;  %357 = vmatpush3.msra.mxu1 %v160_v28 }
  0x3d   :  { %323 = vmatprep.subr.mxu0 %v472_v0  ;;  %358 = vmatprep.subr.mxu1 %v472_v0 }
  0x3e   :  { %324 = vmatpush3.msra.mxu0 %v65_v19  ;;  %359 = vmatpush3.msra.mxu1 %v159_v29 }
  0x3f   :  { %325 = vmatprep.subr.mxu0 %v472_v0  ;;  %360 = vmatprep.subr.mxu1 %v472_v0 }
  0x40   :  { %326 = vmatpush3.msra.mxu0 %v64_v20  ;;  %361 = vmatpush3.msra.mxu1 %v158_v30 }
  0x41   :  { %327 = vmatprep.subr.mxu0 %v472_v0  ;;  %362 = vmatprep.subr.mxu1 %v472_v0 }
  0x42   :  { %328 = vmatpush3.msra.mxu0 %v63_v21  ;;  %363 = vmatpush3.msra.mxu1 %v157_v31 }
  0x43   :  { %329 = vmatprep.subr.mxu0 %v472_v0  ;;  %364 = vmatprep.subr.mxu1 %v472_v0 }
  0x44   :  { %330 = vmatpush3.msra.mxu0 %v62_v22  ;;  %365 = vmatpush3.msra.mxu1 %v156_v32 }
  0x45   :  { %331 = vmatprep.subr.mxu0 %v472_v0  ;;  %366 = vmatprep.subr.mxu1 %v472_v0 }
  0x46   :  { %332 = vmatpush3.msra.mxu0 %v61_v23  ;;  %367 = vmatpush3.msra.mxu1 %v155_v33 }
  0x47   :  { %334 = vmatmul.mubr.f32.vlgmr.msra.gmra.mxu0 %v60_v24 }
 0x107   :  { %v150_v35 = vpop.f32.mrf.mxu0 }
 0x108   :  { %v151_v36 = vadd.f32 %v265_v34, %v150_v35 }
 0x109   :  { %v335_v37 = vpop.f32.mrf.mxu0 }
 0x10a   :  { %379 = vtanh.f32 %v151_v36 }
 0x117   :  { %v380_v38 = vpop.eup %379 }
 0x118   :  { %369 = vmatmul.mubr.f32.vlgmr.msra.gmra.mxu1 %v380_v38 }
 0x1d8   :  { %v244_v40 = vpop.f32.mrf.mxu1 }
 0x1d9   :  { %v245_v41 = vadd.f32 %v266_v39, %v244_v40 }
 0x1da   :  { %v370_v42 = vpop.f32.mrf.mxu1 }
 0x1db   :  { %248 = vst [vmem:[#allocation8] sm:$0xf] %v245_v41 }
 0x1dc   :  { %452 = shalt.err (!%p449_p5)
}
 0x1dd   :  { %258 = dma.vmem_to_hbm [thread:$0]  %s256_s12, 64, %s562_s5, [#allocation4]  }
 0x1de   :  { %465 = dma.done.wait [#allocation4], 64  }
 0x1df   :  { %466 = vsyncadd [#allocation4], 4294967232 }
 0x1e0   :  { %262 = vsyncpa [#allocation3], 1 }
 0x1e1   :  { %263 = vsyncpa [#allocation6], 1 }
 0x1e2   :  { %264 = vsyncpa [#allocation4], 1 }

</bundles_post_ra>
